<compile_context>
chip_gen: v7x
topology: tpu7x:2x2x1
jax: 0.10.0
libtpu: 0.0.40
codegen_flags: <defaults>
</compile_context>

<pallas_src>
import jax
import jax.numpy as jnp
from jax.experimental import pallas as pl
from jax.experimental.pallas import tpu as pltpu


def _sigmoid(x):
    # sigmoid(x) == 0.5 * tanh(0.5 * x) + 0.5  (exact identity, single EUP op)
    return 0.5 * jnp.tanh(0.5 * x) + 0.5


def entnet_kernel(e_ref, q_ref, dd_ref, md_ref, ld_ref, h_out_ref, ans_out_ref):
    # Per-grid-step refs (batch dim squeezed away by BlockSpec None entries):
    #   e_ref (T, L, D)   q_ref (L, D)
    #   dd_ref (4, D, D) = [X, Y, Z, K]
    #   md_ref (7, m, D) = [W, X_b, Y_b, R, bcast(R_b), bcast(Z_b), bcast(K_b)]
    #   ld_ref (2, L, D) = [F, D_param]
    #   h_out_ref (m, D)  ans_out_ref (1, m)
    T = e_ref.shape[0]
    m, D = h_out_ref.shape

    E = e_ref[...]                                   # (T, L, D)
    Qw = q_ref[...]                                  # (L, D)
    X, Y, Z, K = dd_ref[0], dd_ref[1], dd_ref[2], dd_ref[3]
    W, X_b, Y_b, R = md_ref[0], md_ref[1], md_ref[2], md_ref[3]
    R_b = md_ref[4][:, 0:1]                          # (m, 1)
    Z_b = md_ref[5]                                  # (m, D) (row-broadcast)
    K_b = md_ref[6][0:1, :]                          # (1, D)
    F, Dp = ld_ref[0], ld_ref[1]

    # ---------------- hoisted, loop-invariant precompute ---------------------
    S_all = jnp.sum(F[None, :, :] * E, axis=1)                         # (T, D)
    SZ_all = jnp.dot(S_all, Z, preferred_element_type=jnp.float32)     # (T, D)
    WS_all = jnp.sum(W[None, :, :] * S_all[:, None, :],
                     axis=-1, keepdims=True)                           # (T, m, 1)
    bias = X_b + Y_b + Z_b + jnp.dot(W, Y,
                                     preferred_element_type=jnp.float32)  # (m, D)

    # ---------------- serial memory recurrence (static unroll) ---------------
    H = jnp.zeros((m, D), jnp.float32)    # prepare_memory(new_story=True)
    for t in range(T):                    # T is static & small -> static slices
        s_t = S_all[t:t + 1, :]                                        # (1, D)
        g = _sigmoid(jnp.sum(H * s_t, axis=1, keepdims=True)
                     + WS_all[t])                                      # (m, 1)
        cand = _sigmoid(bias
                        + jnp.dot(H, X, preferred_element_type=jnp.float32)
                        + SZ_all[t:t + 1, :])                          # (m, D)
        H = 0.4 * H + 0.6 * (g * cand)
    h_out_ref[...] = H

    # ---------------- answer head (fused) ------------------------------------
    q = jnp.sum(Dp * Qw, axis=0, keepdims=True)                        # (1, D)
    att = jnp.sum(H * q, axis=1, keepdims=True)                        # (m, 1)
    p = jax.nn.softmax(att, axis=0)                                    # (m, 1)
    u = jnp.sum(p * H, axis=0, keepdims=True)                          # (1, D)
    inner = _sigmoid(q + K_b + jnp.dot(u, K,
                                       preferred_element_type=jnp.float32))
    ans_col = R_b + jnp.sum(R * inner, axis=1, keepdims=True)          # (m, 1)
    ans_out_ref[...] = jax.nn.log_softmax(ans_col.T, axis=1)           # (1, m)


def entnet_forward_and_answer(E_s, Q, W, F, X, Y, Z, X_b, Y_b, Z_b,
                              D_param, R, K, R_b, K_b):
    """forward(E_s, new_story=True) followed by answer(Q), one pallas_call.

    Accepts a single story (E_s (T,L,D), Q (L,D)) or a batch of stories
    (E_s (B,T,L,D), Q (B,L,D)).  Returns (H_final, log_softmax answer):
      single:  (m, D), (1, m)        batched: (B, m, D), (B, 1, m)
    """
    single = (E_s.ndim == 3)
    if single:
        E_s, Q = E_s[None], Q[None]
    B, T, L, D = E_s.shape
    m = W.shape[0]
    if T < 1:
        raise ValueError("T == 0 (empty story) must be handled by the caller")

    f32 = jnp.float32
    # Host-side packing: 15 tiny tensors -> 3 contiguous parameter packs.
    pk_DD = jnp.stack([X, Y, Z, K]).astype(f32)                      # (4, D, D)
    pk_mD = jnp.stack([W, X_b, Y_b, R,
                       jnp.broadcast_to(R_b, (m, D)),
                       jnp.broadcast_to(Z_b, (m, D)),
                       jnp.broadcast_to(K_b, (m, D))]).astype(f32)   # (7, m, D)
    pk_LD = jnp.stack([F, D_param]).astype(f32)                      # (2, L, D)

    def const(shape):
        return pl.BlockSpec(shape, lambda b, _n=len(shape): (0,) * _n)

    H_out, ans = pl.pallas_call(
        entnet_kernel,
        out_shape=(jax.ShapeDtypeStruct((B, m, D), f32),
                   jax.ShapeDtypeStruct((B, 1, m), f32)),
        grid=(B,),
        in_specs=[
            pl.BlockSpec((None, T, L, D), lambda b: (b, 0, 0, 0)),   # E_s
            pl.BlockSpec((None, L, D), lambda b: (b, 0, 0)),         # Q
            const((4, D, D)),                                        # pk_DD
            const((7, m, D)),                                        # pk_mD
            const((2, L, D)),                                        # pk_LD
        ],
        out_specs=(pl.BlockSpec((None, m, D), lambda b: (b, 0, 0)),
                   pl.BlockSpec((None, 1, m), lambda b: (b, 0, 0))),
        compiler_params=pltpu.CompilerParams(
            dimension_semantics=("parallel",)),
    )(E_s.astype(f32), Q.astype(f32), pk_DD, pk_mD, pk_LD)

    if single:
        return H_out[0], ans[0]
    return H_out, ans


# --------------------------- pure-JAX reference -------------------------------
def _reference(E_s, W, F, X, Y, Z, X_b, Y_b, Z_b, Q, D_param, R, K, R_b, K_b):
    hp = jax.lax.Precision.HIGHEST
    m, D = W.shape
    H = jnp.zeros((m, D), jnp.float32)
    for t in range(E_s.shape[0]):
        s = jnp.sum(F * E_s[t], axis=0, keepdims=True)
        G = jax.nn.sigmoid(jnp.dot(H, s.T, precision=hp)
                           + jnp.dot(W, s.T, precision=hp))
        new_H = jax.nn.sigmoid(X_b + jnp.dot(H, X, precision=hp)
                               + Y_b + jnp.dot(W, Y, precision=hp)
                               + Z_b + jnp.dot(s, Z, precision=hp))
        H = 0.4 * H + 0.6 * (G * new_H)
    q = jnp.sum(D_param * Q, axis=0, keepdims=True)
    p = jax.nn.softmax(jnp.dot(H, q.T, precision=hp), axis=0)
    u = jnp.sum(p * H, axis=0, keepdims=True)
    inner = jax.nn.sigmoid(q + K_b + jnp.dot(u, K, precision=hp))
    ans_vec = R_b + jnp.dot(R, inner.T, precision=hp)
    return H, jax.nn.log_softmax(ans_vec.T, axis=1)


if __name__ == "__main__":
    embed_size = 32       # n
    m_slots = 8           # memory slots
    sentc_max_len = 8     # k (padded sentence length)
    n_sentences = 4       # facts per story
    n_stories = 2         # batch of stories (uses both TCs on v7x)

    key = jax.random.PRNGKey(0)
    ks = jax.random.split(key, 10)

    # Deterministic parameter init (matches __init__: normal(0, 0.1) / zeros).
    W = 0.1 * jax.random.normal(ks[0], (m_slots, embed_size), jnp.float32)
    F = 0.1 * jax.random.normal(ks[1], (sentc_max_len, embed_size), jnp.float32)
    X = 0.1 * jax.random.normal(ks[2], (embed_size, embed_size), jnp.float32)
    Y = 0.1 * jax.random.normal(ks[3], (embed_size, embed_size), jnp.float32)
    Z = 0.1 * jax.random.normal(ks[4], (embed_size, embed_size), jnp.float32)
    D_param = 0.1 * jax.random.normal(ks[5], (sentc_max_len, embed_size),
                                      jnp.float32)
    R = 0.1 * jax.random.normal(ks[6], (m_slots, embed_size), jnp.float32)
    K = 0.1 * jax.random.normal(ks[7], (embed_size, embed_size), jnp.float32)
    X_b = jnp.zeros((m_slots, embed_size), jnp.float32)
    Y_b = jnp.zeros((m_slots, embed_size), jnp.float32)
    Z_b = jnp.zeros((1, embed_size), jnp.float32)
    R_b = jnp.zeros((m_slots, 1), jnp.float32)
    K_b = jnp.zeros((1, embed_size), jnp.float32)

    # Inputs: B stories of facts E_s and one question per story.
    E_s = jax.random.normal(
        ks[8], (n_stories, n_sentences, sentc_max_len, embed_size), jnp.float32)
    Q = jax.random.normal(ks[9], (n_stories, sentc_max_len, embed_size),
                          jnp.float32)

    fwd = jax.jit(entnet_forward_and_answer)

    # Batched: one pallas_call, grid=(B,) parallel over stories.
    H_out, ans = fwd(E_s, Q, W, F, X, Y, Z, X_b, Y_b, Z_b,
                     D_param, R, K, R_b, K_b)
    H_out = jax.block_until_ready(H_out)
    ans = jax.block_until_ready(ans)
    assert H_out.shape == (n_stories, m_slots, embed_size)
    assert ans.shape == (n_stories, 1, m_slots)

    for b in range(n_stories):
        H_ref, ans_ref = _reference(E_s[b], W, F, X, Y, Z, X_b, Y_b, Z_b,
                                    Q[b], D_param, R, K, R_b, K_b)
        assert jnp.allclose(H_out[b], H_ref, rtol=1e-3, atol=1e-3)
        assert jnp.allclose(ans[b], ans_ref, rtol=1e-3, atol=1e-3)

    # Single-story path (exactly the module's forward(E_s) + answer(Q)).
    H1, ans1 = fwd(E_s[0], Q[0], W, F, X, Y, Z, X_b, Y_b, Z_b,
                   D_param, R, K, R_b, K_b)
    H1 = jax.block_until_ready(H1)
    ans1 = jax.block_until_ready(ans1)
    assert H1.shape == (m_slots, embed_size) and ans1.shape == (1, m_slots)
    assert jnp.allclose(H1, H_out[0], rtol=1e-5, atol=1e-5)
    assert jnp.allclose(ans1, ans[0], rtol=1e-5, atol=1e-5)

    print("KERNEL_OK")
</pallas_src>

<mosaic_0001>
module attributes {stable_mosaic.version = 11 : i64} {
  func.func @entnet_kernel(%arg0: i32, %arg1: memref<1x4x8x32xf32, #tpu.memory_space<vmem>>, %arg2: memref<1x8x32xf32, #tpu.memory_space<vmem>>, %arg3: memref<4x32x32xf32, #tpu.memory_space<vmem>>, %arg4: memref<7x8x32xf32, #tpu.memory_space<vmem>>, %arg5: memref<2x8x32xf32, #tpu.memory_space<vmem>>, %arg6: memref<1x8x32xf32, #tpu.memory_space<vmem>>, %arg7: memref<1x1x8xf32, #tpu.memory_space<vmem>>) attributes {dimension_semantics = [#tpu.dimension_semantics<parallel>], iteration_bounds = array<i64: 2>, scalar_prefetch = 0 : i64, scratch_operands = 0 : i64, tpu.core_type = #tpu.core_type<tc>, window_params = [{transform_indices = @transform_0, window_bounds = array<i64: 1, 4, 8, 32>}, {transform_indices = @transform_1, window_bounds = array<i64: 1, 8, 32>}, {pipeline_mode = #tpu.pipeline_mode<synchronous>, transform_indices = @transform_2, window_bounds = array<i64: 4, 32, 32>}, {pipeline_mode = #tpu.pipeline_mode<synchronous>, transform_indices = @transform_3, window_bounds = array<i64: 7, 8, 32>}, {pipeline_mode = #tpu.pipeline_mode<synchronous>, transform_indices = @transform_4, window_bounds = array<i64: 2, 8, 32>}, {transform_indices = @transform_5, window_bounds = array<i64: 1, 8, 32>}, {transform_indices = @transform_6, window_bounds = array<i64: 1, 1, 8>}]} {
    %c0 = arith.constant 0 : index
    %c0_0 = arith.constant 0 : index
    %c0_1 = arith.constant 0 : index
    %c0_2 = arith.constant 0 : index
    %0 = vector.load %arg1[%c0, %c0_0, %c0_1, %c0_2] : memref<1x4x8x32xf32, #tpu.memory_space<vmem>>, vector<1x4x8x32xf32>
    %1 = vector.shape_cast %0 : vector<1x4x8x32xf32> to vector<4x8x32xf32>
    %c0_3 = arith.constant 0 : index
    %c0_4 = arith.constant 0 : index
    %c0_5 = arith.constant 0 : index
    %2 = vector.load %arg2[%c0_3, %c0_4, %c0_5] : memref<1x8x32xf32, #tpu.memory_space<vmem>>, vector<1x8x32xf32>
    %3 = vector.shape_cast %2 : vector<1x8x32xf32> to vector<8x32xf32>
    %c0_6 = arith.constant 0 : index
    %c0_7 = arith.constant 0 : index
    %c0_8 = arith.constant 0 : index
    %4 = vector.load %arg3[%c0_6, %c0_7, %c0_8] : memref<4x32x32xf32, #tpu.memory_space<vmem>>, vector<1x32x32xf32>
    %5 = vector.shape_cast %4 : vector<1x32x32xf32> to vector<32x32xf32>
    %c1 = arith.constant 1 : index
    %c0_9 = arith.constant 0 : index
    %c0_10 = arith.constant 0 : index
    %6 = vector.load %arg3[%c1, %c0_9, %c0_10] : memref<4x32x32xf32, #tpu.memory_space<vmem>>, vector<1x32x32xf32>
    %7 = vector.shape_cast %6 : vector<1x32x32xf32> to vector<32x32xf32>
    %c2 = arith.constant 2 : index
    %c0_11 = arith.constant 0 : index
    %c0_12 = arith.constant 0 : index
    %8 = vector.load %arg3[%c2, %c0_11, %c0_12] : memref<4x32x32xf32, #tpu.memory_space<vmem>>, vector<1x32x32xf32>
    %9 = vector.shape_cast %8 : vector<1x32x32xf32> to vector<32x32xf32>
    %c3 = arith.constant 3 : index
    %c0_13 = arith.constant 0 : index
    %c0_14 = arith.constant 0 : index
    %10 = vector.load %arg3[%c3, %c0_13, %c0_14] : memref<4x32x32xf32, #tpu.memory_space<vmem>>, vector<1x32x32xf32>
    %11 = vector.shape_cast %10 : vector<1x32x32xf32> to vector<32x32xf32>
    %c0_15 = arith.constant 0 : index
    %c0_16 = arith.constant 0 : index
    %c0_17 = arith.constant 0 : index
    %12 = vector.load %arg4[%c0_15, %c0_16, %c0_17] : memref<7x8x32xf32, #tpu.memory_space<vmem>>, vector<1x8x32xf32>
    %13 = vector.shape_cast %12 : vector<1x8x32xf32> to vector<8x32xf32>
    %c1_18 = arith.constant 1 : index
    %c0_19 = arith.constant 0 : index
    %c0_20 = arith.constant 0 : index
    %14 = vector.load %arg4[%c1_18, %c0_19, %c0_20] : memref<7x8x32xf32, #tpu.memory_space<vmem>>, vector<1x8x32xf32>
    %15 = vector.shape_cast %14 : vector<1x8x32xf32> to vector<8x32xf32>
    %c2_21 = arith.constant 2 : index
    %c0_22 = arith.constant 0 : index
    %c0_23 = arith.constant 0 : index
    %16 = vector.load %arg4[%c2_21, %c0_22, %c0_23] : memref<7x8x32xf32, #tpu.memory_space<vmem>>, vector<1x8x32xf32>
    %17 = vector.shape_cast %16 : vector<1x8x32xf32> to vector<8x32xf32>
    %c3_24 = arith.constant 3 : index
    %c0_25 = arith.constant 0 : index
    %c0_26 = arith.constant 0 : index
    %18 = vector.load %arg4[%c3_24, %c0_25, %c0_26] : memref<7x8x32xf32, #tpu.memory_space<vmem>>, vector<1x8x32xf32>
    %19 = vector.shape_cast %18 : vector<1x8x32xf32> to vector<8x32xf32>
    %c4 = arith.constant 4 : index
    %c0_27 = arith.constant 0 : index
    %c0_28 = arith.constant 0 : index
    %20 = vector.load %arg4[%c4, %c0_27, %c0_28] : memref<7x8x32xf32, #tpu.memory_space<vmem>>, vector<1x8x32xf32>
    %21 = vector.shape_cast %20 : vector<1x8x32xf32> to vector<8x32xf32>
    %22 = vector.extract_strided_slice %21 {offsets = [0, 0], sizes = [8, 1], strides = [1, 1]} : vector<8x32xf32> to vector<8x1xf32>
    %c5 = arith.constant 5 : index
    %c0_29 = arith.constant 0 : index
    %c0_30 = arith.constant 0 : index
    %23 = vector.load %arg4[%c5, %c0_29, %c0_30] : memref<7x8x32xf32, #tpu.memory_space<vmem>>, vector<1x8x32xf32>
    %24 = vector.shape_cast %23 : vector<1x8x32xf32> to vector<8x32xf32>
    %c6 = arith.constant 6 : index
    %c0_31 = arith.constant 0 : index
    %c0_32 = arith.constant 0 : index
    %25 = vector.load %arg4[%c6, %c0_31, %c0_32] : memref<7x8x32xf32, #tpu.memory_space<vmem>>, vector<1x8x32xf32>
    %26 = vector.shape_cast %25 : vector<1x8x32xf32> to vector<8x32xf32>
    %27 = vector.extract_strided_slice %26 {offsets = [0, 0], sizes = [1, 32], strides = [1, 1]} : vector<8x32xf32> to vector<1x32xf32>
    %c0_33 = arith.constant 0 : index
    %c0_34 = arith.constant 0 : index
    %c0_35 = arith.constant 0 : index
    %28 = vector.load %arg5[%c0_33, %c0_34, %c0_35] : memref<2x8x32xf32, #tpu.memory_space<vmem>>, vector<1x8x32xf32>
    %29 = vector.shape_cast %28 : vector<1x8x32xf32> to vector<8x32xf32>
    %c1_36 = arith.constant 1 : index
    %c0_37 = arith.constant 0 : index
    %c0_38 = arith.constant 0 : index
    %30 = vector.load %arg5[%c1_36, %c0_37, %c0_38] : memref<2x8x32xf32, #tpu.memory_space<vmem>>, vector<1x8x32xf32>
    %31 = vector.shape_cast %30 : vector<1x8x32xf32> to vector<8x32xf32>
    %32 = vector.shape_cast %29 : vector<8x32xf32> to vector<1x8x32xf32>
    %33 = vector.broadcast %32 : vector<1x8x32xf32> to vector<4x8x32xf32>
    %34 = arith.mulf %33, %1 : vector<4x8x32xf32>
    %cst = arith.constant dense<0.000000e+00> : vector<4x32xf32>
    %35 = vector.multi_reduction <add>, %34, %cst [1] : vector<4x8x32xf32> to vector<4x32xf32>
    %cst_39 = arith.constant dense<0.000000e+00> : vector<4x32xf32>
    %36 = tpu.matmul %35, %9, %cst_39 {dimension_numbers = #tpu.dot_dimension_numbers<[1], [0], [0], [1], [0, 0, 1, 1], [], []>} : vector<4x32xf32>, vector<32x32xf32>, vector<4x32xf32> -> vector<4x32xf32>
    %37 = vector.shape_cast %13 : vector<8x32xf32> to vector<1x8x32xf32>
    %38 = vector.shape_cast %35 : vector<4x32xf32> to vector<4x1x32xf32>
    %39 = vector.broadcast %37 : vector<1x8x32xf32> to vector<4x8x32xf32>
    %40 = vector.broadcast %38 : vector<4x1x32xf32> to vector<4x8x32xf32>
    %41 = arith.mulf %39, %40 : vector<4x8x32xf32>
    %cst_40 = arith.constant dense<0.000000e+00> : vector<4x8xf32>
    %42 = vector.multi_reduction <add>, %41, %cst_40 [2] : vector<4x8x32xf32> to vector<4x8xf32>
    %43 = vector.shape_cast %42 : vector<4x8xf32> to vector<4x8x1xf32>
    %44 = arith.addf %15, %17 : vector<8x32xf32>
    %45 = arith.addf %44, %24 : vector<8x32xf32>
    %cst_41 = arith.constant dense<0.000000e+00> : vector<8x32xf32>
    %46 = tpu.matmul %13, %7, %cst_41 {dimension_numbers = #tpu.dot_dimension_numbers<[1], [0], [0], [1], [0, 0, 1, 1], [], []>} : vector<8x32xf32>, vector<32x32xf32>, vector<8x32xf32> -> vector<8x32xf32>
    %47 = arith.addf %45, %46 : vector<8x32xf32>
    %cst_42 = arith.constant 0.000000e+00 : f32
    %48 = vector.broadcast %cst_42 : f32 to vector<8x32xf32>
    %49 = vector.extract_strided_slice %35 {offsets = [0, 0], sizes = [1, 32], strides = [1, 1]} : vector<4x32xf32> to vector<1x32xf32>
    %50 = vector.broadcast %49 : vector<1x32xf32> to vector<8x32xf32>
    %51 = arith.mulf %48, %50 : vector<8x32xf32>
    %cst_43 = arith.constant dense<0.000000e+00> : vector<8xf32>
    %52 = vector.multi_reduction <add>, %51, %cst_43 [1] : vector<8x32xf32> to vector<8xf32>
    %53 = vector.shape_cast %52 : vector<8xf32> to vector<8x1xf32>
    %54 = vector.extract_strided_slice %43 {offsets = [0, 0, 0], sizes = [1, 8, 1], strides = [1, 1, 1]} : vector<4x8x1xf32> to vector<1x8x1xf32>
    %55 = vector.shape_cast %54 : vector<1x8x1xf32> to vector<8x1xf32>
    %56 = arith.addf %53, %55 : vector<8x1xf32>
    %cst_44 = arith.constant 5.000000e-01 : f32
    %57 = vector.broadcast %cst_44 : f32 to vector<8x1xf32>
    %58 = arith.mulf %57, %56 : vector<8x1xf32>
    %59 = math.tanh %58 : vector<8x1xf32>
    %cst_45 = arith.constant 5.000000e-01 : f32
    %60 = vector.broadcast %cst_45 : f32 to vector<8x1xf32>
    %61 = arith.mulf %60, %59 : vector<8x1xf32>
    %cst_46 = arith.constant 5.000000e-01 : f32
    %62 = vector.broadcast %cst_46 : f32 to vector<8x1xf32>
    %63 = arith.addf %61, %62 : vector<8x1xf32>
    %cst_47 = arith.constant dense<0.000000e+00> : vector<8x32xf32>
    %64 = tpu.matmul %48, %5, %cst_47 {dimension_numbers = #tpu.dot_dimension_numbers<[1], [0], [0], [1], [0, 0, 1, 1], [], []>} : vector<8x32xf32>, vector<32x32xf32>, vector<8x32xf32> -> vector<8x32xf32>
    %65 = arith.addf %47, %64 : vector<8x32xf32>
    %66 = vector.extract_strided_slice %36 {offsets = [0, 0], sizes = [1, 32], strides = [1, 1]} : vector<4x32xf32> to vector<1x32xf32>
    %67 = vector.broadcast %66 : vector<1x32xf32> to vector<8x32xf32>
    %68 = arith.addf %65, %67 : vector<8x32xf32>
    %cst_48 = arith.constant 5.000000e-01 : f32
    %69 = vector.broadcast %cst_48 : f32 to vector<8x32xf32>
    %70 = arith.mulf %69, %68 : vector<8x32xf32>
    %71 = math.tanh %70 : vector<8x32xf32>
    %cst_49 = arith.constant 5.000000e-01 : f32
    %72 = vector.broadcast %cst_49 : f32 to vector<8x32xf32>
    %73 = arith.mulf %72, %71 : vector<8x32xf32>
    %cst_50 = arith.constant 5.000000e-01 : f32
    %74 = vector.broadcast %cst_50 : f32 to vector<8x32xf32>
    %75 = arith.addf %73, %74 : vector<8x32xf32>
    %cst_51 = arith.constant 4.000000e-01 : f32
    %76 = vector.broadcast %cst_51 : f32 to vector<8x32xf32>
    %77 = arith.mulf %76, %48 : vector<8x32xf32>
    %78 = vector.broadcast %63 : vector<8x1xf32> to vector<8x32xf32>
    %79 = arith.mulf %78, %75 : vector<8x32xf32>
    %cst_52 = arith.constant 6.000000e-01 : f32
    %80 = vector.broadcast %cst_52 : f32 to vector<8x32xf32>
    %81 = arith.mulf %80, %79 : vector<8x32xf32>
    %82 = arith.addf %77, %81 : vector<8x32xf32>
    %83 = vector.extract_strided_slice %35 {offsets = [1, 0], sizes = [1, 32], strides = [1, 1]} : vector<4x32xf32> to vector<1x32xf32>
    %84 = vector.broadcast %83 : vector<1x32xf32> to vector<8x32xf32>
    %85 = arith.mulf %82, %84 : vector<8x32xf32>
    %cst_53 = arith.constant dense<0.000000e+00> : vector<8xf32>
    %86 = vector.multi_reduction <add>, %85, %cst_53 [1] : vector<8x32xf32> to vector<8xf32>
    %87 = vector.shape_cast %86 : vector<8xf32> to vector<8x1xf32>
    %88 = vector.extract_strided_slice %43 {offsets = [1, 0, 0], sizes = [1, 8, 1], strides = [1, 1, 1]} : vector<4x8x1xf32> to vector<1x8x1xf32>
    %89 = vector.shape_cast %88 : vector<1x8x1xf32> to vector<8x1xf32>
    %90 = arith.addf %87, %89 : vector<8x1xf32>
    %cst_54 = arith.constant 5.000000e-01 : f32
    %91 = vector.broadcast %cst_54 : f32 to vector<8x1xf32>
    %92 = arith.mulf %91, %90 : vector<8x1xf32>
    %93 = math.tanh %92 : vector<8x1xf32>
    %cst_55 = arith.constant 5.000000e-01 : f32
    %94 = vector.broadcast %cst_55 : f32 to vector<8x1xf32>
    %95 = arith.mulf %94, %93 : vector<8x1xf32>
    %cst_56 = arith.constant 5.000000e-01 : f32
    %96 = vector.broadcast %cst_56 : f32 to vector<8x1xf32>
    %97 = arith.addf %95, %96 : vector<8x1xf32>
    %cst_57 = arith.constant dense<0.000000e+00> : vector<8x32xf32>
    %98 = tpu.matmul %82, %5, %cst_57 {dimension_numbers = #tpu.dot_dimension_numbers<[1], [0], [0], [1], [0, 0, 1, 1], [], []>} : vector<8x32xf32>, vector<32x32xf32>, vector<8x32xf32> -> vector<8x32xf32>
    %99 = arith.addf %47, %98 : vector<8x32xf32>
    %100 = vector.extract_strided_slice %36 {offsets = [1, 0], sizes = [1, 32], strides = [1, 1]} : vector<4x32xf32> to vector<1x32xf32>
    %101 = vector.broadcast %100 : vector<1x32xf32> to vector<8x32xf32>
    %102 = arith.addf %99, %101 : vector<8x32xf32>
    %cst_58 = arith.constant 5.000000e-01 : f32
    %103 = vector.broadcast %cst_58 : f32 to vector<8x32xf32>
    %104 = arith.mulf %103, %102 : vector<8x32xf32>
    %105 = math.tanh %104 : vector<8x32xf32>
    %cst_59 = arith.constant 5.000000e-01 : f32
    %106 = vector.broadcast %cst_59 : f32 to vector<8x32xf32>
    %107 = arith.mulf %106, %105 : vector<8x32xf32>
    %cst_60 = arith.constant 5.000000e-01 : f32
    %108 = vector.broadcast %cst_60 : f32 to vector<8x32xf32>
    %109 = arith.addf %107, %108 : vector<8x32xf32>
    %cst_61 = arith.constant 4.000000e-01 : f32
    %110 = vector.broadcast %cst_61 : f32 to vector<8x32xf32>
    %111 = arith.mulf %110, %82 : vector<8x32xf32>
    %112 = vector.broadcast %97 : vector<8x1xf32> to vector<8x32xf32>
    %113 = arith.mulf %112, %109 : vector<8x32xf32>
    %cst_62 = arith.constant 6.000000e-01 : f32
    %114 = vector.broadcast %cst_62 : f32 to vector<8x32xf32>
    %115 = arith.mulf %114, %113 : vector<8x32xf32>
    %116 = arith.addf %111, %115 : vector<8x32xf32>
    %117 = vector.extract_strided_slice %35 {offsets = [2, 0], sizes = [1, 32], strides = [1, 1]} : vector<4x32xf32> to vector<1x32xf32>
    %118 = vector.broadcast %117 : vector<1x32xf32> to vector<8x32xf32>
    %119 = arith.mulf %116, %118 : vector<8x32xf32>
    %cst_63 = arith.constant dense<0.000000e+00> : vector<8xf32>
    %120 = vector.multi_reduction <add>, %119, %cst_63 [1] : vector<8x32xf32> to vector<8xf32>
    %121 = vector.shape_cast %120 : vector<8xf32> to vector<8x1xf32>
    %122 = vector.extract_strided_slice %43 {offsets = [2, 0, 0], sizes = [1, 8, 1], strides = [1, 1, 1]} : vector<4x8x1xf32> to vector<1x8x1xf32>
    %123 = vector.shape_cast %122 : vector<1x8x1xf32> to vector<8x1xf32>
    %124 = arith.addf %121, %123 : vector<8x1xf32>
    %cst_64 = arith.constant 5.000000e-01 : f32
    %125 = vector.broadcast %cst_64 : f32 to vector<8x1xf32>
    %126 = arith.mulf %125, %124 : vector<8x1xf32>
    %127 = math.tanh %126 : vector<8x1xf32>
    %cst_65 = arith.constant 5.000000e-01 : f32
    %128 = vector.broadcast %cst_65 : f32 to vector<8x1xf32>
    %129 = arith.mulf %128, %127 : vector<8x1xf32>
    %cst_66 = arith.constant 5.000000e-01 : f32
    %130 = vector.broadcast %cst_66 : f32 to vector<8x1xf32>
    %131 = arith.addf %129, %130 : vector<8x1xf32>
    %cst_67 = arith.constant dense<0.000000e+00> : vector<8x32xf32>
    %132 = tpu.matmul %116, %5, %cst_67 {dimension_numbers = #tpu.dot_dimension_numbers<[1], [0], [0], [1], [0, 0, 1, 1], [], []>} : vector<8x32xf32>, vector<32x32xf32>, vector<8x32xf32> -> vector<8x32xf32>
    %133 = arith.addf %47, %132 : vector<8x32xf32>
    %134 = vector.extract_strided_slice %36 {offsets = [2, 0], sizes = [1, 32], strides = [1, 1]} : vector<4x32xf32> to vector<1x32xf32>
    %135 = vector.broadcast %134 : vector<1x32xf32> to vector<8x32xf32>
    %136 = arith.addf %133, %135 : vector<8x32xf32>
    %cst_68 = arith.constant 5.000000e-01 : f32
    %137 = vector.broadcast %cst_68 : f32 to vector<8x32xf32>
    %138 = arith.mulf %137, %136 : vector<8x32xf32>
    %139 = math.tanh %138 : vector<8x32xf32>
    %cst_69 = arith.constant 5.000000e-01 : f32
    %140 = vector.broadcast %cst_69 : f32 to vector<8x32xf32>
    %141 = arith.mulf %140, %139 : vector<8x32xf32>
    %cst_70 = arith.constant 5.000000e-01 : f32
    %142 = vector.broadcast %cst_70 : f32 to vector<8x32xf32>
    %143 = arith.addf %141, %142 : vector<8x32xf32>
    %cst_71 = arith.constant 4.000000e-01 : f32
    %144 = vector.broadcast %cst_71 : f32 to vector<8x32xf32>
    %145 = arith.mulf %144, %116 : vector<8x32xf32>
    %146 = vector.broadcast %131 : vector<8x1xf32> to vector<8x32xf32>
    %147 = arith.mulf %146, %143 : vector<8x32xf32>
    %cst_72 = arith.constant 6.000000e-01 : f32
    %148 = vector.broadcast %cst_72 : f32 to vector<8x32xf32>
    %149 = arith.mulf %148, %147 : vector<8x32xf32>
    %150 = arith.addf %145, %149 : vector<8x32xf32>
    %151 = vector.extract_strided_slice %35 {offsets = [3, 0], sizes = [1, 32], strides = [1, 1]} : vector<4x32xf32> to vector<1x32xf32>
    %152 = vector.broadcast %151 : vector<1x32xf32> to vector<8x32xf32>
    %153 = arith.mulf %150, %152 : vector<8x32xf32>
    %cst_73 = arith.constant dense<0.000000e+00> : vector<8xf32>
    %154 = vector.multi_reduction <add>, %153, %cst_73 [1] : vector<8x32xf32> to vector<8xf32>
    %155 = vector.shape_cast %154 : vector<8xf32> to vector<8x1xf32>
    %156 = vector.extract_strided_slice %43 {offsets = [3, 0, 0], sizes = [1, 8, 1], strides = [1, 1, 1]} : vector<4x8x1xf32> to vector<1x8x1xf32>
    %157 = vector.shape_cast %156 : vector<1x8x1xf32> to vector<8x1xf32>
    %158 = arith.addf %155, %157 : vector<8x1xf32>
    %cst_74 = arith.constant 5.000000e-01 : f32
    %159 = vector.broadcast %cst_74 : f32 to vector<8x1xf32>
    %160 = arith.mulf %159, %158 : vector<8x1xf32>
    %161 = math.tanh %160 : vector<8x1xf32>
    %cst_75 = arith.constant 5.000000e-01 : f32
    %162 = vector.broadcast %cst_75 : f32 to vector<8x1xf32>
    %163 = arith.mulf %162, %161 : vector<8x1xf32>
    %cst_76 = arith.constant 5.000000e-01 : f32
    %164 = vector.broadcast %cst_76 : f32 to vector<8x1xf32>
    %165 = arith.addf %163, %164 : vector<8x1xf32>
    %cst_77 = arith.constant dense<0.000000e+00> : vector<8x32xf32>
    %166 = tpu.matmul %150, %5, %cst_77 {dimension_numbers = #tpu.dot_dimension_numbers<[1], [0], [0], [1], [0, 0, 1, 1], [], []>} : vector<8x32xf32>, vector<32x32xf32>, vector<8x32xf32> -> vector<8x32xf32>
    %167 = arith.addf %47, %166 : vector<8x32xf32>
    %168 = vector.extract_strided_slice %36 {offsets = [3, 0], sizes = [1, 32], strides = [1, 1]} : vector<4x32xf32> to vector<1x32xf32>
    %169 = vector.broadcast %168 : vector<1x32xf32> to vector<8x32xf32>
    %170 = arith.addf %167, %169 : vector<8x32xf32>
    %cst_78 = arith.constant 5.000000e-01 : f32
    %171 = vector.broadcast %cst_78 : f32 to vector<8x32xf32>
    %172 = arith.mulf %171, %170 : vector<8x32xf32>
    %173 = math.tanh %172 : vector<8x32xf32>
    %cst_79 = arith.constant 5.000000e-01 : f32
    %174 = vector.broadcast %cst_79 : f32 to vector<8x32xf32>
    %175 = arith.mulf %174, %173 : vector<8x32xf32>
    %cst_80 = arith.constant 5.000000e-01 : f32
    %176 = vector.broadcast %cst_80 : f32 to vector<8x32xf32>
    %177 = arith.addf %175, %176 : vector<8x32xf32>
    %cst_81 = arith.constant 4.000000e-01 : f32
    %178 = vector.broadcast %cst_81 : f32 to vector<8x32xf32>
    %179 = arith.mulf %178, %150 : vector<8x32xf32>
    %180 = vector.broadcast %165 : vector<8x1xf32> to vector<8x32xf32>
    %181 = arith.mulf %180, %177 : vector<8x32xf32>
    %cst_82 = arith.constant 6.000000e-01 : f32
    %182 = vector.broadcast %cst_82 : f32 to vector<8x32xf32>
    %183 = arith.mulf %182, %181 : vector<8x32xf32>
    %184 = arith.addf %179, %183 : vector<8x32xf32>
    %c0_83 = arith.constant 0 : index
    %c0_84 = arith.constant 0 : index
    %c0_85 = arith.constant 0 : index
    %185 = vector.load %arg6[%c0_83, %c0_84, %c0_85] : memref<1x8x32xf32, #tpu.memory_space<vmem>>, vector<1x8x32xf32>
    %186 = vector.shape_cast %185 : vector<1x8x32xf32> to vector<8x32xf32>
    %187 = vector.shape_cast %184 : vector<8x32xf32> to vector<1x8x32xf32>
    tpu.vector_store %arg6[%c0_83, %c0_84, %c0_85], %187 {strides = array<i32>} : memref<1x8x32xf32, #tpu.memory_space<vmem>>, vector<1x8x32xf32>,
    %188 = arith.mulf %31, %3 : vector<8x32xf32>
    %cst_86 = arith.constant dense<0.000000e+00> : vector<32xf32>
    %189 = vector.multi_reduction <add>, %188, %cst_86 [0] : vector<8x32xf32> to vector<32xf32>
    %190 = vector.shape_cast %189 : vector<32xf32> to vector<1x32xf32>
    %191 = vector.broadcast %190 : vector<1x32xf32> to vector<8x32xf32>
    %192 = arith.mulf %184, %191 : vector<8x32xf32>
    %cst_87 = arith.constant dense<0.000000e+00> : vector<8xf32>
    %193 = vector.multi_reduction <add>, %192, %cst_87 [1] : vector<8x32xf32> to vector<8xf32>
    %194 = vector.shape_cast %193 : vector<8xf32> to vector<8x1xf32>
    %cst_88 = arith.constant dense<0xFF800000> : vector<1xf32>
    %195 = vector.multi_reduction <maximumf>, %194, %cst_88 [0] : vector<8x1xf32> to vector<1xf32>
    %cst_89 = arith.constant 0xFF800000 : f32
    %196 = vector.broadcast %cst_89 : f32 to vector<1xf32>
    %197 = arith.maximumf %196, %195 : vector<1xf32>
    %198 = vector.shape_cast %197 : vector<1xf32> to vector<1x1xf32>
    %199 = vector.broadcast %198 : vector<1x1xf32> to vector<8x1xf32>
    %200 = arith.subf %194, %199 : vector<8x1xf32>
    %201 = math.exp %200 : vector<8x1xf32>
    %cst_90 = arith.constant dense<0.000000e+00> : vector<1xf32>
    %202 = vector.multi_reduction <add>, %201, %cst_90 [0] : vector<8x1xf32> to vector<1xf32>
    %203 = vector.shape_cast %202 : vector<1xf32> to vector<1x1xf32>
    %204 = vector.broadcast %203 : vector<1x1xf32> to vector<8x1xf32>
    %205 = arith.divf %201, %204 : vector<8x1xf32>
    %206 = vector.broadcast %205 : vector<8x1xf32> to vector<8x32xf32>
    %207 = arith.mulf %206, %184 : vector<8x32xf32>
    %cst_91 = arith.constant dense<0.000000e+00> : vector<32xf32>
    %208 = vector.multi_reduction <add>, %207, %cst_91 [0] : vector<8x32xf32> to vector<32xf32>
    %209 = vector.shape_cast %208 : vector<32xf32> to vector<1x32xf32>
    %210 = arith.addf %190, %27 : vector<1x32xf32>
    %cst_92 = arith.constant dense<0.000000e+00> : vector<1x32xf32>
    %211 = tpu.matmul %209, %11, %cst_92 {dimension_numbers = #tpu.dot_dimension_numbers<[1], [0], [0], [1], [0, 0, 1, 1], [], []>} : vector<1x32xf32>, vector<32x32xf32>, vector<1x32xf32> -> vector<1x32xf32>
    %212 = arith.addf %210, %211 : vector<1x32xf32>
    %cst_93 = arith.constant 5.000000e-01 : f32
    %213 = vector.broadcast %cst_93 : f32 to vector<1x32xf32>
    %214 = arith.mulf %213, %212 : vector<1x32xf32>
    %215 = math.tanh %214 : vector<1x32xf32>
    %cst_94 = arith.constant 5.000000e-01 : f32
    %216 = vector.broadcast %cst_94 : f32 to vector<1x32xf32>
    %217 = arith.mulf %216, %215 : vector<1x32xf32>
    %cst_95 = arith.constant 5.000000e-01 : f32
    %218 = vector.broadcast %cst_95 : f32 to vector<1x32xf32>
    %219 = arith.addf %217, %218 : vector<1x32xf32>
    %220 = vector.broadcast %219 : vector<1x32xf32> to vector<8x32xf32>
    %221 = arith.mulf %19, %220 : vector<8x32xf32>
    %cst_96 = arith.constant dense<0.000000e+00> : vector<8xf32>
    %222 = vector.multi_reduction <add>, %221, %cst_96 [1] : vector<8x32xf32> to vector<8xf32>
    %223 = vector.shape_cast %222 : vector<8xf32> to vector<8x1xf32>
    %224 = arith.addf %22, %223 : vector<8x1xf32>
    %225 = tpu.transpose %224, [1, 0] : vector<8x1xf32> -> vector<1x8xf32>
    %cst_97 = arith.constant dense<0xFF800000> : vector<1xf32>
    %226 = vector.multi_reduction <maximumf>, %225, %cst_97 [1] : vector<1x8xf32> to vector<1xf32>
    %cst_98 = arith.constant 0xFF800000 : f32
    %227 = vector.broadcast %cst_98 : f32 to vector<1xf32>
    %228 = arith.maximumf %227, %226 : vector<1xf32>
    %229 = vector.shape_cast %228 : vector<1xf32> to vector<1x1xf32>
    %230 = vector.broadcast %229 : vector<1x1xf32> to vector<1x8xf32>
    %231 = arith.subf %225, %230 : vector<1x8xf32>
    %232 = math.exp %231 : vector<1x8xf32>
    %cst_99 = arith.constant dense<0.000000e+00> : vector<1xf32>
    %233 = vector.multi_reduction <add>, %232, %cst_99 [1] : vector<1x8xf32> to vector<1xf32>
    %234 = vector.shape_cast %233 : vector<1xf32> to vector<1x1xf32>
    %235 = math.log %234 : vector<1x1xf32>
    %236 = vector.broadcast %235 : vector<1x1xf32> to vector<1x8xf32>
    %237 = arith.subf %231, %236 : vector<1x8xf32>
    %c0_100 = arith.constant 0 : index
    %c0_101 = arith.constant 0 : index
    %c0_102 = arith.constant 0 : index
    %238 = vector.load %arg7[%c0_100, %c0_101, %c0_102] : memref<1x1x8xf32, #tpu.memory_space<vmem>>, vector<1x1x8xf32>
    %239 = vector.shape_cast %238 : vector<1x1x8xf32> to vector<1x8xf32>
    %240 = vector.shape_cast %237 : vector<1x8xf32> to vector<1x1x8xf32>
    tpu.vector_store %arg7[%c0_100, %c0_101, %c0_102], %240 {strides = array<i32>} : memref<1x1x8xf32, #tpu.memory_space<vmem>>, vector<1x1x8xf32>,
    return
  }
  func.func @transform_0(%arg0: i32) -> (i32, i32, i32, i32) {
    %c0_i32 = arith.constant 0 : i32
    %c0_i32_0 = arith.constant 0 : i32
    %c0_i32_1 = arith.constant 0 : i32
    %c0_i32_2 = arith.constant 0 : i32
    return %arg0, %c0_i32, %c0_i32_0, %c0_i32_1 : i32, i32, i32, i32
  }
  func.func @transform_1(%arg0: i32) -> (i32, i32, i32) {
    %c0_i32 = arith.constant 0 : i32
    %c0_i32_0 = arith.constant 0 : i32
    %c0_i32_1 = arith.constant 0 : i32
    return %arg0, %c0_i32, %c0_i32_0 : i32, i32, i32
  }
  func.func @transform_2(%arg0: i32) -> (i32, i32, i32) {
    %c0_i32 = arith.constant 0 : i32
    %c0_i32_0 = arith.constant 0 : i32
    %c0_i32_1 = arith.constant 0 : i32
    %c0_i32_2 = arith.constant 0 : i32
    return %c0_i32, %c0_i32_0, %c0_i32_1 : i32, i32, i32
  }
  func.func @transform_3(%arg0: i32) -> (i32, i32, i32) {
    %c0_i32 = arith.constant 0 : i32
    %c0_i32_0 = arith.constant 0 : i32
    %c0_i32_1 = arith.constant 0 : i32
    %c0_i32_2 = arith.constant 0 : i32
    return %c0_i32, %c0_i32_0, %c0_i32_1 : i32, i32, i32
  }
  func.func @transform_4(%arg0: i32) -> (i32, i32, i32) {
    %c0_i32 = arith.constant 0 : i32
    %c0_i32_0 = arith.constant 0 : i32
    %c0_i32_1 = arith.constant 0 : i32
    %c0_i32_2 = arith.constant 0 : i32
    return %c0_i32, %c0_i32_0, %c0_i32_1 : i32, i32, i32
  }
  func.func @transform_5(%arg0: i32) -> (i32, i32, i32) {
    %c0_i32 = arith.constant 0 : i32
    %c0_i32_0 = arith.constant 0 : i32
    %c0_i32_1 = arith.constant 0 : i32
    return %arg0, %c0_i32, %c0_i32_0 : i32, i32, i32
  }
  func.func @transform_6(%arg0: i32) -> (i32, i32, i32) {
    %c0_i32 = arith.constant 0 : i32
    %c0_i32_0 = arith.constant 0 : i32
    %c0_i32_1 = arith.constant 0 : i32
    return %arg0, %c0_i32, %c0_i32_0 : i32, i32, i32
  }
}

</mosaic_0001>

<bundles_post_ra>
// kernel: entnet_forward_and_answer.1
= control target key start
LH: loop header
LB: loop body
LE: loop exit
PB: predicated region body
PF: predicated region fallthrough
CT: control target
= control target key end

     0   :  { %12 = vsyncpa [#allocation3], 0  ;;  %s1937_s0 = inlined_call_operand.vmem [shape: f32[2,4,8,32], index: 0, kind: input, shape index: {}]   ;;  %s1938_s1 = inlined_call_operand.vmem [shape: f32[2,8,32], index: 1, kind: input, shape index: {}]   ;;  %s1939_s2 = inlined_call_operand.vmem [shape: f32[4,32,32], index: 2, kind: input, shape index: {}]   ;;  %s1940_s3 = inlined_call_operand.vmem [shape: f32[7,8,32], index: 3, kind: input, shape index: {}]   ;;  %s1941_s4 = inlined_call_operand.vmem [shape: f32[2,8,32], index: 4, kind: input, shape index: {}]   ;;  %s1942_s5 = inlined_call_operand.hbm [shape: f32[2,8,32], index: 5, kind: output, shape index: {0}]   ;;  %s1943_s6 = inlined_call_operand.hbm [shape: f32[2,1,8], index: 6, kind: output, shape index: {1}]  }
   0x1   :  { %14 = vsyncpa [#allocation3 + $0x1], 0 }
   0x2   :  { %15 = vsyncpa [#allocation5], 0 }
   0x3   :  { %17 = vsyncpa [#allocation5 + $0x1], 0  ;;  %s1611_s21 = smov 0   ;;  %s1613_s22 = smov 0  }
   0x4   :  { %s1615_s23 = smov 0   ;;  %s1617_s24 = smov 0  }
   0x5 LB: > { %s1632_s25 = sadd.s32 4294967295, %s1569_s24   ;;  %s1209_s26 = sadd.s32 4294967294, %s1569_s24   ;;  %s1569_s24 = sphi %s1617_s24, %s1949_s24   ;;  %s1565_s23 = sphi %s1615_s23, %s1948_s23   ;;  %s1561_s22 = sphi %s1613_s22, %s1947_s22   ;;  %s1557_s21 = sphi %s1611_s21, %s1946_s21  }
   0x6   : > { %s1636_s27 = sadd.s32 1, %s1569_s24   ;;  %s145_s28 = sadd.s32 1, %s1565_s23 }
   0x7   : > { %s142_s29 = ssub.s32 %s1569_s24, %s1636_s27  ;;  %p155_p0 = scmp.ne.s32.totalorder %s1565_s23, %s1561_s22 }
   0x8   : > { %p143_p1 = scmp.eq.s32.totalorder %s142_s29, 0  ;;  %p156_p2 = scmp.eq.s32.totalorder %s1632_s25, 1 }
   0x9   : > { %p161_p3 = scmp.ne.s32.totalorder %s1561_s22, %s1557_s21  ;;  %p162_p4 = scmp.eq.s32.totalorder %s1209_s26, 1 }
   0xa   : > { %s1647_s30 = scalar_select %p143_p1, %s1565_s23, %s145_s28  }
   0xb   : > { %p1649_p5 = por %p156_p2, %p155_p0  ;;  %p1653_p6 = por %p162_p4, %p161_p3 }
   0xc   : > { %p1212_p7 = scmp.ge.s32.totalorder %s1569_s24, 1  ;;  %p230_p8 = scmp.lt.s32.totalorder %s1569_s24, 3 }
   0xe   : > { %p231_p9 = pnand %p1212_p7, %p230_p8 }
   0xf   : > { %v1221_v0 = vld [vmem:[%s1939_s2 + $0x40] sm:$0xff] (!%p231_p9)  ;;  %v1222_v1 = vld [vmem:[%s1939_s2 + $0x48] sm:$0xff] (!%p231_p9)  ;;  %v1223_v2 = vld [vmem:[%s1939_s2 + $0x50] sm:$0xff] (!%p231_p9)  ;;  %v1571_v3 = vmov (!%p231_p9), 0.0|0.0   ;;  %p268_p10 = scmp.lt.s32.totalorder (!%p231_p9), %s1632_s25, 1  ;;  %vm1572_vm0 = vmmov (!%p231_p9), 0  }
  0x10   : > { %234 = sbr.rel (%p231_p9) target bundleno = 2059 (0x80b), region = 40  ;;  %1360 = vmatprep.subr.bf16.mxu0 (!%p231_p9), %v1571_v3  ;;  %v1361_v4 = vpack.c.bf16 (!%p231_p9), %v1222_v1, %v1221_v0  ;;  %v1224_v5 = vld [vmem:[%s1939_s2 + $0x58] sm:$0xff] (!%p231_p9)  ;;  %1366 = vmatprep.subr.bf16.mxu1 (!%p231_p9), %v1571_v3  ;;  %v1217_v6 = vld [vmem:[%s1939_s2 + $0x20] sm:$0xff] (!%p231_p9)  ;;  %v1218_v7 = vld [vmem:[%s1939_s2 + $0x28] sm:$0xff] (!%p231_p9)  ;;  %v1573_v9 = vmov (!%p231_p9), 0.0   ;;  %vm321_vm1 = vcmask (!%p231_p9), 261120  }
  0x11   : > { %v1367_v8 = vpack.c.bf16 (!%p231_p9), %v1218_v7, %v1217_v6  ;;  %1291 = vmatprep.mubr.msk.f32.mxu0 (!%p231_p9), %vm1572_vm0, %v1573_v9  ;;  %1302 = vmatprep.mubr.msk.f32.mxu1 (!%p231_p9), %vm1572_vm0, %v1573_v9  ;;  %v1364_v10 = vpack.c.bf16 (!%p231_p9), %v1224_v5, %v1223_v2  ;;  %v1219_v11 = vld [vmem:[%s1939_s2 + $0x30] sm:$0xff] (!%p231_p9)  ;;  %v1220_v12 = vld [vmem:[%s1939_s2 + $0x38] sm:$0xff] (!%p231_p9)  ;;  %v314_v14 = vld [vmem:[%s1941_s4] sm:$0xff] (!%p231_p9)  ;;  %vm354_vm2 = vcmask (!%p231_p9), 1041409   ;;  %vm356_vm3 = vcmask (!%p231_p9), 1042434   ;;  %s1243_s14 = sshll.u32 (!%p231_p9), %s1632_s25, 7 }
  0x12   : > { %1362 = vmatpush3.bf16.msra.mxu0 (!%p231_p9), %v1361_v4  ;;  %v1370_v13 = vpack.c.bf16 (!%p231_p9), %v1220_v12, %v1219_v11  ;;  %v282_v15 = vld [vmem:[%s1939_s2] sm:$0xff] (!%p231_p9)  ;;  %v283_v16 = vld [vmem:[%s1939_s2 + $0x8] sm:$0xff] (!%p231_p9)  ;;  %v284_v34 = vld [vmem:[%s1939_s2 + $0x10] sm:$0xff] (!%p231_p9)  ;;  %vm358_vm4 = vcmask (!%p231_p9), 1043459   ;;  %v607_v6 = vlaneseq (!%p231_p9)  ;;  %vm1065_vm5 = vcmask (!%p231_p9), 57344   ;;  %s1867_s17 = scalar_lea.hbm (!%p231_p9), %s1942_s5, %s1243_s14  ;;  %s1574_s28 = smov (!%p231_p9), [#allocation2]  }
  0x13   : > { %1363 = vmatprep.subr.bf16.mxu0 (!%p231_p9), %v1571_v3  ;;  %1368 = vmatpush3.bf16.msra.mxu1 (!%p231_p9), %v1367_v8  ;;  %v1712_v24 = vld [vmem:[%s1940_s3] sm:$0xff] (!%p231_p9)  ;;  %v1718_v29 = vpack.c.bf16 (!%p231_p9), %v283_v16, %v282_v15  ;;  %v285_v35 = vld [vmem:[%s1939_s2 + $0x18] sm:$0xff] (!%p231_p9)  ;;  %v1230_v11 = vld [vmem:[%s1940_s3 + $0x10] sm:$0xff] (!%p231_p9) }
  0x14   : > { %1369 = vmatprep.subr.bf16.mxu1 (!%p231_p9), %v1571_v3  ;;  %v1733_v41 = vpack.c.bf16 (!%p231_p9), %v285_v35, %v284_v34  ;;  %v1766_v7 = vshrl.u32 (!%p231_p9), %v607_v6, 7  ;;  %v1233_v16 = vld [vmem:[%s1940_s3 + $0x28] sm:$0xff] (!%p231_p9) }
  0x16   : > { %1365 = vmatpush3.bf16.msra.mxu0 (!%p231_p9), %v1364_v10  ;;  %v1229_v10 = vld [vmem:[%s1940_s3 + $0x8] sm:$0xff] (!%p231_p9)  ;;  %v896_v15 = vsub.s32 (!%p231_p9), 3, %v1766_v7 }
  0x17   : > { %s1685_s26 = scalar_select %p268_p10, %s1632_s25, 1  ;;  %1372 = vmatprep.subr.bf16.mxu0 %v1571_v3  ;;  %1371 = vmatpush3.bf16.msra.mxu1 %v1370_v13  ;;  %v448_v12 = vadd.f32 %v1230_v11, %v1229_v10  ;;  %v704_v13 = vsub.s32 1, %v1766_v7 }
  0x18   : > { %1378 = vmatprep.subr.bf16.mxu1 %v1571_v3 }
  0x19   : > { %s1247_s11 = sshll.u32 %s1685_s26, 5  ;;  %s1216_s19 = sshll.u32 %s1685_s26, 3 }
  0x1a   : > { %s272_s16 = scalar_lea.vmem %s1937_s0, %s1247_s11  ;;  %1303 = vmatmul.mubr.msk.f32.vlgmr.msra.gmra.mrb[0].mxu1 %vm321_vm1, %v1712_v24  ;;  %s276_s29 = scalar_lea.vmem %s1938_s1, %s1216_s19 }
  0x1b   : > { %v277_v17 = vld [vmem:[%s272_s16] sm:$0xff]  ;;  %v278_v18 = vld [vmem:[%s272_s16 + $0x8] sm:$0xff]  ;;  %v279_v19 = vld [vmem:[%s272_s16 + $0x10] sm:$0xff]  ;;  %1380 = vmatpush3.bf16.msra.mxu1 %v1718_v29  ;;  %1324 = vmatprep.mubr.msk.f32.mxu1 %vm1572_vm0, %v1573_v9  ;;  %s1826_s26 = sand.u32 1, %s1561_s22  }
  0x1c   : > { %v280_v20 = vld [vmem:[%s272_s16 + $0x18] sm:$0xff]  ;;  %v317_v21 = vmul.f32 %v314_v14, %v277_v17  ;;  %v318_v22 = vmul.f32 %v314_v14, %v278_v18  ;;  %v319_v23 = vmul.f32 %v314_v14, %v279_v19  ;;  %1381 = vmatprep.subr.bf16.mxu1 %v1571_v3  ;;  %s1213_s11 = sshll.u32 %s1826_s26, 3  ;;  %s1080_s19 = scalar_lea.sflag [#allocation3], %s1826_s26 }
  0x1d   : > { %v320_v25 = vmul.f32 %v314_v14, %v280_v20  ;;  %v800_v14 = vsub.s32 2, %v1766_v7  ;;  %v449_v20 = vadd.f32 %v1233_v16, %v448_v12  ;;  %s1829_s12 = scalar_lea.vmem [#allocation2], %s1213_s11 }
  0x1e   : > { %v322_v26 = vsel %vm321_vm1, %v317_v21, 0.0  ;;  %v329_v27 = vsel %vm321_vm1, %v318_v22, 0.0  ;;  %v336_v28 = vsel %vm321_vm1, %v319_v23, 0.0  ;;  %s1097_s18 = sshll.u32 %s1829_s12, 4  ;;  %s1098_s18 = int_to_ptr.vmem [resolvable:$true] %s1097_s18 }
  0x1f   : > { %v323_v30 = vrot.slane %v322_v26, 4  ;;  %v330_v31 = vrot.slane %v329_v27, 4  ;;  %v337_v32 = vrot.slane %v336_v28, 4  ;;  %v343_v33 = vsel %vm321_vm1, %v320_v25, 0.0  ;;  %1383 = vmatpush3.bf16.msra.mxu1 %v1733_v41  ;;  %s1475_s20 = scalar_lea.vmem %s1098_s18, 128 }
  0x20   : > { %v344_v36 = vrot.slane %v343_v33, 4  ;;  %1390 = vmatprep.subr.bf16.mxu1 %v1571_v3  ;;  %p1476_p11 = scmp.ne.s32.totalorder %s1098_s18, %s1475_s20 }
  0x21   : > { %v324_v37 = vadd.f32 %v323_v30, %v322_v26  ;;  %v331_v38 = vadd.f32 %v330_v31, %v329_v27  ;;  %v338_v39 = vadd.f32 %v337_v32, %v336_v28  ;;  %v609_v27 = vsub.s32 0, %v1766_v7 }
  0x22   : > { %v345_v40 = vadd.f32 %v344_v36, %v343_v33  ;;  %p1477_p12 = pnand %p1476_p11, %p1649_p5 }
  0x23   : > { %v325_v42 = vrot.slane %v324_v37, 2  ;;  %v332_v43 = vrot.slane %v331_v38, 2  ;;  %v339_v44 = vrot.slane %v338_v39, 2 }
  0x24   : > { %v346_v45 = vrot.slane %v345_v40, 2  ;;  %p1478_p13 = pneg %p1477_p12 }
  0x25   : > { %v326_v46 = vadd.f32 %v325_v42, %v324_v37  ;;  %v333_v47 = vadd.f32 %v332_v43, %v331_v38  ;;  %v340_v48 = vadd.f32 %v339_v44, %v338_v39 }
  0x26   : > { %v347_v49 = vadd.f32 %v346_v45, %v345_v40 }
  0x27   : > { %v327_v50 = vrot.slane %v326_v46, 1  ;;  %v334_v51 = vrot.slane %v333_v47, 1  ;;  %v341_v52 = vrot.slane %v340_v48, 1 }
  0x28   : > { %v348_v53 = vrot.slane %v347_v49, 1 }
  0x29   : > { %v328_v54 = vadd.f32 %v327_v50, %v326_v46  ;;  %v1737_v55 = vadd.f32 %v334_v51, %v333_v47  ;;  %v1739_v56 = vadd.f32 %v341_v52, %v340_v48 }
  0x2a   : > { %v1741_v57 = vadd.f32 %v348_v53, %v347_v49 }
  0x2b   : > { %v355_v58 = vsel %vm354_vm2, %v1737_v55, %v328_v54  ;;  %v432_v59 = vmul.f32 %v328_v54, %v1712_v24  ;;  %v524_v60 = vmul.f32 0.0, %v328_v54  ;;  %v433_v1 = vmul.f32 %v1737_v55, %v1712_v24 }
  0x2c   : > { %v357_v61 = vsel %vm356_vm3, %v1739_v56, %v355_v58  ;;  %v434_v47 = vmul.f32 %v1739_v56, %v1712_v24 }
  0x2d   : > { %v359_v62 = vsel %vm358_vm4, %v1741_v57, %v357_v61  ;;  %v436_v63 = vsel %vm321_vm1, %v432_v59, 0.0  ;;  %v525_v0 = vsel %vm321_vm1, %v524_v60, 0.0  ;;  %v439_v2 = vsel %vm321_vm1, %v433_v1, 0.0 }
  0x2e   : > { %1292 = vmatmul.mubr.msk.f32.vlgmr.msra.gmra.mrb[0].mxu0 %vm321_vm1, %v359_v62  ;;  %437 = vadd.xlane.f32.xlu0 %v436_v63  ;;  %v442_v48 = vsel %vm321_vm1, %v434_v47, 0.0 }
  0x2f   : > { %1374 = vmatpush3.bf16.msra.mxu0 %v1718_v29  ;;  %1313 = vmatprep.mubr.msk.f32.mxu0 %vm1572_vm0, %v1573_v9 }
  0x30   : > { %1375 = vmatprep.subr.bf16.mxu0 %v1571_v3  ;;  %440 = vadd.xlane.f32.xlu1 %v439_v2 }
  0x32   : > { %526 = vadd.xlane.f32.xlu0 %v525_v0 }
  0x33   : > { %1377 = vmatpush3.bf16.msra.mxu0 %v1733_v41 }
  0x34   : > { %1384 = vmatprep.subr.bf16.mxu0 %v1571_v3 }
  0x36   : > { %1314 = vmatmul.mubr.f32.vlgmr.msra.gmra.mrb[2].mxu0 %v1573_v9  ;;  %443 = vadd.xlane.f32.xlu0 %v442_v48 }
  0x37   : > { %1386 = vmatpush3.bf16.msra.mxu0 %v1718_v29  ;;  %1335 = vmatprep.mubr.msk.f32.mxu0 %vm1572_vm0, %v1573_v9 }
  0x38   : > { %1387 = vmatprep.subr.bf16.mxu0 %v1571_v3 }
  0x3b   : > { %1389 = vmatpush3.bf16.msra.mxu0 %v1733_v41 }
  0x3c   : > { %1396 = vmatprep.subr.bf16.mxu0 %v1571_v3 }
  0xbb   : > { %v438_v8 = vpop.xlane.xlu0 %437 }
  0xbd   : > { %v441_v49 = vpop.xlane.xlu1 %440 }
  0xbf   : > { %v527_v18 = vpop.xlane.xlu0 %526 }
  0xc0   : > { %v528_v25 = vadd.f32 %v527_v18, %v438_v8  ;;  %v435_v8 = vmul.f32 %v1741_v57, %v1712_v24 }
  0xc2   : > { %v529_v28 = vmul.f32 0.5, %v528_v25  ;;  %v445_v10 = vsel %vm321_vm1, %v435_v8, 0.0 }
  0xc3   : > { %446 = vadd.xlane.f32.xlu0 %v445_v10  ;;  %v444_v11 = vpop.xlane.xlu0 %443 }
  0xc4   : > { %1449 = vtanh.f32 %v529_v28 }
  0xce   : > { %v1450_v36 = vpop.eup %1449 }
  0xcf   : > { %v531_v37 = vmul.f32 0.5, %v1450_v36  ;;  %v281_v36 = vld [vmem:[%s276_s29] sm:$0xff]  ;;  %s1479_s29 = sshll.u32 %s1574_s28, 4  ;;  %s1480_s29 = int_to_ptr.vmem [resolvable:$false] %s1479_s29 }
  0xd0   : > { %s1481_s9 = scalar_lea.vmem %s1480_s29, 256  ;;  %p1482_p0 = scmp.lt.s32.totalorder %s1098_s18, %s1480_s29 }
  0xd1   : > { %v532_v40 = vadd.f32 0.5, %v531_v37  ;;  %v1235_v37 = vld [vmem:[%s1941_s4 + $0x8] sm:$0xff]  ;;  %p1483_p1 = scmp.lt.s32.totalorder %s1481_s9, %s1475_s20 }
  0xd3   : > { %p1484_p2 = por %p1483_p1, %p1482_p0 }
  0xd5   : > { %p1485_p3 = pnand %p1484_p2, %p1478_p13 }
  0xed   : > { %v519_v4 = vpop.f32.mrb[0].mxu1 }
  0xee   : > { %v1304_v5 = vpop.f32.mrb[1].mxu1  ;;  %v1784_v26 = vadd.f32 %v519_v4, %v449_v20 }
 0x101   : > { %v428_v17 = vpop.f32.mrb[0].mxu0 }
 0x102   : > { %v1293_v19 = vpop.f32.mrb[1].mxu0  ;;  %v705_v21 = vrot.slane %v428_v17, %v704_v13  ;;  %v1780_v22 = vrot.slane %v428_v17, %v800_v14  ;;  %v1782_v23 = vrot.slane %v428_v17, %v896_v15  ;;  %v610_v32 = vrot.slane %v428_v17, %v609_v27 }
 0x109   : > { %v602_v30 = vpop.f32.mrb[2].mxu0 }
 0x10a   : > { %v606_v31 = vadd.f32 %v602_v30, %v1784_v26  ;;  %v1315_v33 = vpop.f32.mrb[3].mxu0 }
 0x10c   : > { %v611_v34 = vadd.f32 %v610_v32, %v606_v31 }
 0x10e   : > { %v612_v35 = vmul.f32 0.5, %v611_v34 }
 0x110   : > { %1451 = vtanh.f32 %v612_v35 }
 0x11a   : > { %v1452_v38 = vpop.eup %1451 }
 0x11b   : > { %v614_v39 = vmul.f32 0.5, %v1452_v38 }
 0x11d   : > { %v615_v42 = vadd.f32 0.5, %v614_v39  ;;  %v908_v39 = vmul.f32 %v1235_v37, %v281_v36 }
 0x11f   : > { %v616_v43 = vmul.f32 %v615_v42, %v532_v40 }
 0x121   : > { %v617_v44 = vmul.f32 0.6, %v616_v43 }
 0x123   : > { %1325 = vmatmul.mubr.msk.f32.vlgmr.msra.gmra.mrb[2].mxu1 %vm321_vm1, %v617_v44  ;;  %v619_v45 = vmul.f32 %v617_v44, %v1737_v55  ;;  %v711_v1 = vmul.f32 0.4, %v617_v44  ;;  %v909_v44 = vsel %vm321_vm1, %v908_v39, 0.0 }
 0x124   : > { %1392 = vmatpush3.bf16.msra.mxu1 %v1718_v29  ;;  %1346 = vmatprep.mubr.msk.f32.mxu1 %vm1572_vm0, %v1573_v9 }
 0x125   : > { %v620_v46 = vsel %vm321_vm1, %v619_v45, 0.0  ;;  %1393 = vmatprep.subr.bf16.mxu1 %v1571_v3 }
 0x126   : > { %621 = vadd.xlane.f32.xlu1 %v620_v46  ;;  %v910_v46 = vrot.slane %v909_v44, 4 }
 0x128   : > { %1395 = vmatpush3.bf16.msra.mxu1 %v1733_v41  ;;  %v911_v48 = vadd.f32 %v910_v46, %v909_v44  ;;  %v1231_v44 = vld [vmem:[%s1940_s3 + $0x18] sm:$0xff] }
 0x1b3   : > { %v622_v50 = vpop.xlane.xlu1 %621 }
 0x1b4   : > { %v623_v51 = vadd.f32 %v622_v50, %v441_v49  ;;  %v912_v49 = vrot.slane %v911_v48, 2 }
 0x1b6   : > { %v624_v29 = vmul.f32 0.5, %v623_v51 }
 0x1b8   : > { %1453 = vtanh.f32 %v624_v29  ;;  %v913_v29 = vadd.f32 %v912_v49, %v911_v48  ;;  %v1232_v48 = vld [vmem:[%s1940_s3 + $0x20] sm:$0xff] }
 0x1c2   : > { %v1454_v59 = vpop.eup %1453 }
 0x1c3   : > { %v626_v41 = vmul.f32 0.5, %v1454_v59 }
 0x1c5   : > { %v627_v62 = vadd.f32 0.5, %v626_v41 }
 0x1f6   : > { %v697_v52 = vpop.f32.mrb[2].mxu1 }
 0x1f7   : > { %v701_v53 = vadd.f32 %v697_v52, %v1784_v26  ;;  %v1326_v54 = vpop.f32.mrb[3].mxu1 }
 0x1f9   : > { %v706_v55 = vadd.f32 %v705_v21, %v701_v53 }
 0x1fb   : > { %v707_v58 = vmul.f32 0.5, %v706_v55  ;;  %v914_v55 = vrot.slane %v913_v29, 1 }
 0x1fd   : > { %1455 = vtanh.f32 %v707_v58  ;;  %v915_v41 = vadd.f32 %v914_v55, %v913_v29 }
 0x207   : > { %v1456_v60 = vpop.eup %1455 }
 0x208   : > { %v709_v61 = vmul.f32 0.5, %v1456_v60 }
 0x20a   : > { %v710_v63 = vadd.f32 0.5, %v709_v61 }
 0x20c   : > { %v712_v0 = vmul.f32 %v710_v63, %v627_v62  ;;  %v1225_v63 = vld [vmem:[%s1939_s2 + $0x60] sm:$0xff] }
 0x20e   : > { %v713_v2 = vmul.f32 0.6, %v712_v0  ;;  %v1226_v0 = vld [vmem:[%s1939_s2 + $0x68] sm:$0xff] }
 0x210   : > { %v714_v4 = vadd.f32 %v713_v2, %v711_v1  ;;  %v1227_v1 = vld [vmem:[%s1939_s2 + $0x70] sm:$0xff]  ;;  %v1397_v2 = vpack.c.bf16 %v1226_v0, %v1225_v63 }
 0x212   : > { %1336 = vmatmul.mubr.msk.f32.vlgmr.msra.gmra.mrb[4].mxu0 %vm321_vm1, %v714_v4  ;;  %v715_v5 = vmul.f32 %v714_v4, %v1739_v56  ;;  %v807_v30 = vmul.f32 0.4, %v714_v4  ;;  %v1228_v4 = vld [vmem:[%s1939_s2 + $0x78] sm:$0xff] }
 0x213   : > { %1357 = vmatprep.mubr.msk.f32.mxu0 %vm1572_vm0, %v1573_v9  ;;  %1398 = vmatpush3.bf16.msra.mxu0 %v1397_v2 }
 0x214   : > { %v716_v6 = vsel %vm321_vm1, %v715_v5, 0.0  ;;  %v1400_v5 = vpack.c.bf16 %v1228_v4, %v1227_v1  ;;  %1399 = vmatprep.subr.bf16.mxu0 %v1571_v3 }
 0x215   : > { %717 = vadd.xlane.f32.xlu1 %v716_v6 }
 0x217   : > { %1401 = vmatpush3.bf16.msra.mxu0 %v1400_v5 }
 0x2a2   : > { %v718_v12 = vpop.xlane.xlu1 %717 }
 0x2a3   : > { %v719_v13 = vadd.f32 %v718_v12, %v444_v11 }
 0x2a5   : > { %v720_v14 = vmul.f32 0.5, %v719_v13 }
 0x2a7   : > { %1457 = vtanh.f32 %v720_v14 }
 0x2b1   : > { %v1458_v18 = vpop.eup %1457 }
 0x2b2   : > { %v722_v19 = vmul.f32 0.5, %v1458_v18 }
 0x2b4   : > { %v723_v21 = vadd.f32 0.5, %v722_v19 }
 0x2e5   : > { %v793_v15 = vpop.f32.mrb[4].mxu0 }
 0x2e6   : > { %v797_v16 = vadd.f32 %v793_v15, %v1784_v26  ;;  %v1337_v56 = vpop.f32.mrb[5].mxu0 }
 0x2e8   : > { %v802_v9 = vadd.f32 %v1780_v22, %v797_v16  ;;  %v447_v22 = vpop.xlane.xlu0 %446 }
 0x2ea   : > { %v803_v17 = vmul.f32 0.5, %v802_v9 }
 0x2ec   : > { %1459 = vtanh.f32 %v803_v17 }
 0x2f6   : > { %v1460_v24 = vpop.eup %1459 }
 0x2f7   : > { %v805_v20 = vmul.f32 0.5, %v1460_v24 }
 0x2f9   : > { %v806_v25 = vadd.f32 0.5, %v805_v20 }
 0x2fb   : > { %v808_v28 = vmul.f32 %v806_v25, %v723_v21 }
 0x2fd   : > { %v809_v31 = vmul.f32 0.6, %v808_v28 }
 0x2ff   : > { %v810_v32 = vadd.f32 %v809_v31, %v807_v30 }
 0x301   : > { %1347 = vmatmul.mubr.msk.f32.vlgmr.msra.gmra.mrb[4].mxu1 %vm321_vm1, %v810_v32  ;;  %v811_v33 = vmul.f32 %v810_v32, %v1741_v57  ;;  %v903_v59 = vmul.f32 0.4, %v810_v32 }
 0x303   : > { %v812_v34 = vsel %vm321_vm1, %v811_v33, 0.0 }
 0x304   : > { %813 = vadd.xlane.f32.xlu1 %v812_v34 }
 0x391   : > { %v814_v35 = vpop.xlane.xlu1 %813 }
 0x392   : > { %v815_v38 = vadd.f32 %v814_v35, %v447_v22  ;;  %v1234_v35 = vld [vmem:[%s1940_s3 + $0x30] sm:$0xff] }
 0x393   : > { %v945_v36 = vadd.f32 %v1234_v35, %v915_v41 }
 0x394   : > { %v816_v40 = vmul.f32 0.5, %v815_v38 }
 0x396   : > { %1461 = vtanh.f32 %v816_v40 }
 0x3a0   : > { %v1462_v50 = vpop.eup %1461 }
 0x3a1   : > { %v818_v51 = vmul.f32 0.5, %v1462_v50 }
 0x3d4   : > { %v889_v42 = vpop.f32.mrb[4].mxu1 }
 0x3d5   : > { %v893_v57 = vadd.f32 %v889_v42, %v1784_v26  ;;  %v1348_v43 = vpop.f32.mrb[5].mxu1  ;;  %v819_v26 = vadd.f32 0.5, %v818_v51 }
 0x3d7   : > { %v898_v45 = vadd.f32 %v1782_v23, %v893_v57 }
 0x3d9   : > { %v899_v47 = vmul.f32 0.5, %v898_v45 }
 0x3db   : > { %1463 = vtanh.f32 %v899_v47 }
 0x3e5   : > { %v1464_v52 = vpop.eup %1463 }
 0x3e6   : > { %v901_v53 = vmul.f32 0.5, %v1464_v52 }
 0x3e8   : > { %v902_v54 = vadd.f32 0.5, %v901_v53 }
 0x3ea   : > { %v904_v58 = vmul.f32 %v902_v54, %v819_v26 }
 0x3ec   : > { %v905_v23 = vmul.f32 0.6, %v904_v58 }
 0x3ee   : > { %v906_v60 = vadd.f32 %v905_v23, %v903_v59 }
 0x3f0   : > { %v916_v61 = vmul.f32 %v915_v41, %v906_v60  ;;  %907 = vst.msk [vmem:[%s1829_s12] sm:$0xff] %vm321_vm1, %v906_v60 }
 0x3f2   : > { %v917_v62 = vsel %vm321_vm1, %v916_v61, 0.0 }
 0x3f3   : > { %918 = vadd.xlane.f32.xlu0 %v917_v62 }
 0x480   : > { %v919_v6 = vpop.xlane.xlu0 %918 }
 0x481   : > { %v920_v8 = vrot.slane %v919_v6, 4 }
 0x483   : > { %v921_v10 = vmax.f32 %v919_v6, %v920_v8 }
 0x485   : > { %v922_v11 = vrot.slane %v921_v10, 2 }
 0x487   : > { %v923_v12 = vmax.f32 %v921_v10, %v922_v11 }
 0x489   : > { %v924_v13 = vrot.slane %v923_v12, 1 }
 0x48b   : > { %v925_v14 = vmax.f32 %v923_v12, %v924_v13 }
 0x48d   : > { %v926_v15 = vsub.f32 %v919_v6, %v925_v14 }
 0x48f   : > { %v927_v16 = vmul.f32 1.442695, %v926_v15 }
 0x491   : > { %1465 = vpow2.f32 %v927_v16 }
 0x49b   : > { %v1466_v56 = vpop.eup %1465 }
 0x49c   : > { %v929_v9 = vrot.slane %v1466_v56, 4 }
 0x49e   : > { %v930_v17 = vadd.f32 %v1466_v56, %v929_v9 }
 0x4a0   : > { %v931_v18 = vrot.slane %v930_v17, 2 }
 0x4a2   : > { %v932_v19 = vadd.f32 %v931_v18, %v930_v17 }
 0x4a4   : > { %v933_v24 = vrot.slane %v932_v19, 1 }
 0x4a6   : > { %v934_v20 = vadd.f32 %v933_v24, %v932_v19 }
 0x4a8   : > { %1467 = vrcp.f32 %v934_v20 }
 0x4b2   : > { %v1468_v3 = vpop.eup %1467 }
 0x4b3   : > { %v936_v21 = vmul.f32 %v1468_v3, %v1466_v56 }
 0x4b5   : > { %v937_v25 = vmul.f32 %v936_v21, %v906_v60 }
 0x4b7   : > { %v938_v28 = vsel %vm321_vm1, %v937_v25, 0.0 }
 0x4b8   : > { %v939_v30 = vrot.slane %v938_v28, 4 }
 0x4ba   : > { %v940_v31 = vadd.f32 %v939_v30, %v938_v28 }
 0x4bc   : > { %v941_v32 = vrot.slane %v940_v31, 2 }
 0x4be   : > { %v942_v33 = vadd.f32 %v941_v32, %v940_v31 }
 0x4c0   : > { %v943_v34 = vrot.slane %v942_v33, 1 }
 0x4c2   : > { %v944_v22 = vadd.f32 %v943_v34, %v942_v33 }
 0x4c4   : > { %1358 = vmatmul.mubr.msk.f32.vlgmr.msra.gmra.mrb[6].mxu0 %vm321_vm1, %v944_v22 }
 0x597   : > { %v1015_v37 = vpop.f32.mrb[6].mxu0 }
 0x598   : > { %v1019_v38 = vadd.f32 %v1015_v37, %v945_v36  ;;  %v1359_v39 = vpop.f32.mrb[7].mxu0 }
 0x59a   : > { %v1020_v40 = vmul.f32 0.5, %v1019_v38 }
 0x59c   : > { %1469 = vtanh.f32 %v1020_v40 }
 0x5a6   : > { %v1470_v42 = vpop.eup %1469 }
 0x5a7   : > { %v1022_v57 = vmul.f32 0.5, %v1470_v42 }
 0x5a9   : > { %v1023_v43 = vadd.f32 0.5, %v1022_v57 }
 0x5ab   : > { %v1027_v45 = vrot.slane %v1023_v43, %v609_v27 }
 0x5ad   : > { %v1028_v46 = vmul.f32 %v1231_v44, %v1027_v45 }
 0x5af   : > { %v1029_v47 = vsel %vm321_vm1, %v1028_v46, 0.0 }
 0x5b0   : > { %1030 = vadd.xlane.f32.xlu1 %v1029_v47 }
 0x63d   : > { %v1031_v49 = vpop.xlane.xlu1 %1030 }
 0x63e   : > { %v1032_v50 = vadd.f32 %v1232_v48, %v1031_v49 }
 0x640   : > { %1033 = vxpose.xlu0.b32.start.end [1/1] (short) (narrow) %v1032_v50, 8 }
 0x6c0   : > { %v1049_v51 = vpop.trf.xlu0 }
 0x6c1   : > { %v1066_v29 = vsel %vm1065_vm5, %v1049_v51, -inf }
 0x6c2   : > { %1067 = vmax.xlane.f32.xlu1 %v1066_v29 }
 0x74f   : > { %v1068_v7 = vpop.xlane.xlu1 %1067 }
 0x750   : > { %v1069_v27 = vsub.f32 %v1049_v51, %v1068_v7 }
 0x752   : > { %v1070_v52 = vmul.f32 1.442695, %v1069_v27 }
 0x754   : > { %1471 = vpow2.f32 %v1070_v52 }
 0x75e   : > { %v1472_v53 = vpop.eup %1471 }
 0x75f   : > { %v1072_v26 = vsel %vm1065_vm5, %v1472_v53, 0.0 }
 0x760   : > { %1073 = vadd.xlane.f32.xlu1 %v1072_v26 }
 0x761   : > { %1488 = shalt.err (!%p1485_p3)
}
 0x762   : > { %s1489_s12 = scalar_lea.hbm %s1867_s17, 128  ;;  %s1493_s13 = scalar_lea.hbm %s1942_s5, 256 }
 0x763   : > { %p1490_p4 = scmp.ne.s32.totalorder %s1867_s17, %s1489_s12  ;;  %p1494_p9 = scmp.lt.u32.totalorder %s1867_s17, %s1942_s5 }
 0x764   : > { %p1495_p10 = scmp.lt.u32.totalorder %s1493_s13, %s1489_s12  ;;  %p1497_p12 = scmp.lt.u32.totalorder %s1489_s12, %s1867_s17 }
 0x765   : > { %p1491_p7 = pnand %p1490_p4, %p1649_p5 }
 0x766   : > { %p1496_p11 = por %p1495_p10, %p1494_p9 }
 0x767   : > { %p1492_p8 = pneg %p1491_p7 }
 0x768   : > { %p1498_p13 = por %p1497_p12, %p1496_p11 }
 0x76a   : > { %p1499_p0 = pnand %p1498_p13, %p1492_p8 }
 0x76c   : > { %1502 = shalt.err (!%p1499_p0)
}
 0x76d   : > { %1402 = dma.vmem_to_hbm [thread:$0]  (%p1649_p5), %s1098_s18, 128, %s1867_s17, %s1080_s19  }
 0x76e   : > { %s1244_s16 = sshll.u32 %s1632_s25, 4  ;;  %s267_s20 = scalar_lea.vmem [#allocation4], %s1826_s26 }
 0x76f   : > { %s1110_s28 = sshll.u32 %s267_s20, 4  ;;  %s1893_s12 = scalar_lea.hbm %s1943_s6, %s1244_s16  ;;  %s1895_s28 = int_to_ptr.vmem [resolvable:$true] %s1110_s28 }
 0x770   : > { %s1085_s17 = scalar_lea.sflag [#allocation5], %s1826_s26  ;;  %s1503_s18 = scalar_lea.vmem %s1895_s28, 16 }
 0x771   : > { %p1504_p1 = scmp.ne.s32.totalorder %s1895_s28, %s1503_s18  ;;  %s1575_s25 = smov [#allocation4]  }
 0x772   : > { %s1507_s19 = sshll.u32 %s1575_s25, 4  ;;  %s1508_s19 = int_to_ptr.vmem [resolvable:$false] %s1507_s19 }
 0x773   : > { %p1505_p2 = pnand %p1504_p1, %p1649_p5  ;;  %s1509_s10 = scalar_lea.vmem %s1508_s19, 32 }
 0x774   : > { %p1510_p4 = scmp.lt.s32.totalorder %s1895_s28, %s1508_s19  ;;  %p1511_p7 = scmp.lt.s32.totalorder %s1509_s10, %s1503_s18 }
 0x775   : > { %p1506_p3 = pneg %p1505_p2 }
 0x776   : > { %p1512_p8 = por %p1511_p7, %p1510_p4 }
 0x778   : > { %p1513_p9 = pnand %p1512_p8, %p1506_p3 }
 0x7ed   : > { %v1074_v54 = vpop.xlane.xlu1 %1073 }
 0x7ee   : > { %1473 = vlog2.f32 %v1074_v54 }
 0x7f8   : > { %v1474_v55 = vpop.eup %1473 }
 0x7f9   : > { %v1076_v58 = vmul.f32 0.6931472, %v1474_v55 }
 0x7fb   : > { %v1077_v59 = vsub.f32 %v1069_v27, %v1076_v58 }
 0x7fd   : > { %1078 = vst.msk [vmem:[%s267_s20] sm:$0x1] %vm1065_vm5, %v1077_v59 }
 0x7fe   : > { %1516 = shalt.err (!%p1513_p9)
}
 0x7ff   : > { %s1517_s26 = scalar_lea.hbm %s1893_s12, 16  ;;  %s1521_s14 = scalar_lea.hbm %s1943_s6, 32 }
 0x800   : > { %p1518_p10 = scmp.ne.s32.totalorder %s1893_s12, %s1517_s26  ;;  %p1522_p13 = scmp.lt.u32.totalorder %s1893_s12, %s1943_s6 }
 0x801   : > { %p1523_p0 = scmp.lt.u32.totalorder %s1521_s14, %s1517_s26  ;;  %p1525_p2 = scmp.lt.u32.totalorder %s1517_s26, %s1893_s12 }
 0x802   : > { %p1519_p11 = pnand %p1518_p10, %p1649_p5 }
 0x803   : > { %p1524_p1 = por %p1523_p0, %p1522_p13 }
 0x804   : > { %p1520_p12 = pneg %p1519_p11 }
 0x805   : > { %p1526_p3 = por %p1525_p2, %p1524_p1 }
 0x807   : > { %p1527_p4 = pnand %p1526_p3, %p1520_p12 }
 0x809   : > { %1530 = shalt.err (!%p1527_p4)
}
 0x80a   : > { %1403 = dma.vmem_to_hbm [thread:$0]  (%p1649_p5), %s1895_s28, 16, %s1893_s12, %s1085_s17  }
 0x80b PF: > { %p1413_p7 = scmp.ge.s32.totalorder %s1569_s24, 2  ;;  %s1122_s20 = sand.u32 1, %s1557_s21  }
 0x80c   : > { %s1123_s29 = scalar_lea.sflag [#allocation3], %s1122_s20 }
 0x80d   : > { %p1407_p8 = pnand %p1413_p7, %p1653_p6 }
 0x80f   : > { %1548 = dma.done.wait (!%p1407_p8), %s1123_s29, 128  }
 0x810   : > { %1550 = vsyncadd (!%p1407_p8), %s1123_s29, 4294967168  ;;  %s1132_s9 = scalar_lea.sflag [#allocation5], %s1122_s20 }
 0x811   : > { %1552 = dma.done.wait (!%p1407_p8), %s1132_s9, 16  }
 0x812   : > { %1554 = vsyncadd (!%p1407_p8), %s1132_s9, 4294967280  ;;  %p20_p5 = scmp.ge.s32.totalorder %s1636_s27, 4   ;;  %s1946_s21 = smov %s1561_s22 }
 0x813   : > { %s1947_s22 = smov %s1565_s23  ;;  %s1948_s23 = smov %s1647_s30 }
 0x814   : > { %s1949_s24 = smov %s1636_s27  ;;  %22 = sbr.rel (!%p20_p5) target bundleno = 5 (0x5), region = 105 }
 0x81b   :  { %1136 = vsyncpa [#allocation3], 1 }
 0x81c   :  { %1138 = vsyncpa [#allocation3 + $0x1], 1 }
 0x81d   :  { %1139 = vsyncpa [#allocation5], 1 }
 0x81e   :  { %1141 = vsyncpa [#allocation5 + $0x1], 1 }

</bundles_post_ra>
